<compile_context>
chip_gen: v7x
topology: tpu7x:2x2x1
jax: 0.10.0
libtpu: 0.0.40
codegen_flags: <defaults>
</compile_context>

<pallas_src>
import math

import jax
import jax.numpy as jnp
from jax.experimental import pallas as pl
from jax.experimental.pallas import tpu as pltpu


# ----------------------------------------------------------------------------
# Tile-size helper: largest t <= target with size % t == 0 and t % align == 0,
# else the full dimension (full blocks are always legal).
# ----------------------------------------------------------------------------
def _pick_tile(size, target, align):
    if size <= target:
        return size
    t = (target // align) * align
    while t >= align:
        if size % t == 0:
            return t
        t -= align
    return size


# ----------------------------------------------------------------------------
# qkv projection:  x (M, K) @ w3 (3, K, N)  ->  (3, M, N)   (bias-free)
# Output is laid out slot-major so the attention kernel can address q/k/v
# directly with BlockSpec index_maps (no transpose in HBM).
# ----------------------------------------------------------------------------
def _qkv_matmul_kernel(x_ref, w_ref, o_ref, acc_ref):
    @pl.when(pl.program_id(3) == 0)
    def _init():
        acc_ref[...] = jnp.zeros(acc_ref.shape, acc_ref.dtype)

    acc_ref[...] += jnp.dot(x_ref[...], w_ref[0],
                            preferred_element_type=jnp.float32)

    @pl.when(pl.program_id(3) == pl.num_programs(3) - 1)
    def _store():
        o_ref[0] = acc_ref[...].astype(o_ref.dtype)


def qkv_linear(x, w3, *, tm_target=256, tn_target=512, tk_target=512):
    M, K = x.shape
    n_slots, _, N = w3.shape
    tm = _pick_tile(M, tm_target, 8)
    tn = _pick_tile(N, tn_target, 128)
    tk = _pick_tile(K, tk_target, 128)
    grid = (n_slots, M // tm, N // tn, K // tk)
    return pl.pallas_call(
        _qkv_matmul_kernel,
        out_shape=jax.ShapeDtypeStruct((n_slots, M, N), x.dtype),
        grid=grid,
        in_specs=[
            pl.BlockSpec((tm, tk), lambda s, i, j, k: (i, k)),
            pl.BlockSpec((1, tk, tn), lambda s, i, j, k: (s, k, j)),
        ],
        out_specs=pl.BlockSpec((1, tm, tn), lambda s, i, j, k: (s, i, j)),
        scratch_shapes=[pltpu.VMEM((tm, tn), jnp.float32)],
        compiler_params=pltpu.CompilerParams(
            dimension_semantics=("parallel", "parallel", "parallel", "arbitrary")),
    )(x, w3)


# ----------------------------------------------------------------------------
# Output projection:  y = x @ w + b   (tiled accumulator matmul with bias)
# ----------------------------------------------------------------------------
def _bias_matmul_kernel(x_ref, w_ref, b_ref, o_ref, acc_ref):
    @pl.when(pl.program_id(2) == 0)
    def _init():
        acc_ref[...] = jnp.zeros(acc_ref.shape, acc_ref.dtype)

    acc_ref[...] += jnp.dot(x_ref[...], w_ref[...],
                            preferred_element_type=jnp.float32)

    @pl.when(pl.program_id(2) == pl.num_programs(2) - 1)
    def _store():
        o_ref[...] = (acc_ref[...] + b_ref[...].astype(jnp.float32)
                      ).astype(o_ref.dtype)


def linear_bias(x, w_t, b, *, tm_target=256, tn_target=512, tk_target=512):
    M, K = x.shape
    N = w_t.shape[1]
    tm = _pick_tile(M, tm_target, 8)
    tn = _pick_tile(N, tn_target, 128)
    tk = _pick_tile(K, tk_target, 128)
    grid = (M // tm, N // tn, K // tk)
    return pl.pallas_call(
        _bias_matmul_kernel,
        out_shape=jax.ShapeDtypeStruct((M, N), x.dtype),
        grid=grid,
        in_specs=[
            pl.BlockSpec((tm, tk), lambda i, j, k: (i, k)),
            pl.BlockSpec((tk, tn), lambda i, j, k: (k, j)),
            pl.BlockSpec((1, tn), lambda i, j, k: (0, j)),
        ],
        out_specs=pl.BlockSpec((tm, tn), lambda i, j, k: (i, j)),
        scratch_shapes=[pltpu.VMEM((tm, tn), jnp.float32)],
        compiler_params=pltpu.CompilerParams(
            dimension_semantics=("parallel", "parallel", "arbitrary")),
    )(x, w_t, b.reshape(1, N))


# ----------------------------------------------------------------------------
# Flash-style attention with fused QKNorm + RoPE.
# Grid: (batch, q-tile, k-tile), key tiles last ("arbitrary" reduction axis).
# The kernel loops over heads: D-wide column slices of the (tile, dim) rows.
# Scratch: per-head running max / denom + a lane-dense (tq, dim) accumulator,
# so the output is stored once, full width, directly in (B, L, dim) layout.
# ----------------------------------------------------------------------------
def _rot_half(x, even_mask):
    # interleaved pairs: out[2i] = -x[2i+1], out[2i+1] = x[2i]
    d = x.shape[-1]
    if d % 128 == 0:
        nxt = pltpu.roll(x, d - 1, 1)   # x[j+1]  (roll by -1, XLU)
        prv = pltpu.roll(x, 1, 1)       # x[j-1]
    else:
        # small / non-lane-aligned head dims (toy shapes): plain shift via concat
        z = jnp.zeros_like(x[:, :1])
        nxt = jnp.concatenate([x[:, 1:], z], axis=1)
        prv = jnp.concatenate([z, x[:, :-1]], axis=1)
    return jnp.where(even_mask, -nxt, prv)


def _attn_kernel(qs_ref, ks_ref, cq_ref, sq_ref, ck_ref, sk_ref,
                 q_ref, k_ref, v_ref, o_ref, m_ref, l_ref, acc_ref):
    ki = pl.program_id(2)
    D = qs_ref.shape[-1]
    dim = acc_ref.shape[-1]
    H = dim // D
    cdt = q_ref.dtype   # matmul operand dtype (bf16 stays bf16, f32 stays f32)

    @pl.when(ki == 0)
    def _init():
        m_ref[...] = jnp.full(m_ref.shape, -jnp.inf, m_ref.dtype)
        l_ref[...] = jnp.zeros(l_ref.shape, l_ref.dtype)
        acc_ref[...] = jnp.zeros(acc_ref.shape, acc_ref.dtype)

    qs = qs_ref[...].astype(jnp.float32)    # (1, D), already has 1/sqrt(D) folded in
    ks = ks_ref[...].astype(jnp.float32)    # (1, D)
    cq = cq_ref[...].astype(jnp.float32)    # (tq, D)
    sq = sq_ref[...].astype(jnp.float32)
    ck = ck_ref[...].astype(jnp.float32)    # (tk, D)
    sk = sk_ref[...].astype(jnp.float32)

    even_q = (jax.lax.broadcasted_iota(jnp.int32, cq.shape, 1) % 2) == 0
    even_k = (jax.lax.broadcasted_iota(jnp.int32, ck.shape, 1) % 2) == 0

    for h in range(H):
        lo, hi = h * D, (h + 1) * D
        q_h = q_ref[0, 0, :, lo:hi].astype(jnp.float32)   # (tq, D)
        k_h = k_ref[0, 0, :, lo:hi].astype(jnp.float32)   # (tk, D)
        v_h = v_ref[0, 0, :, lo:hi]                       # (tk, D)

        # QKNorm: RMSNorm over head dim + learned scale (scale carries 1/sqrt(D) for q)
        q_h = q_h * jax.lax.rsqrt(jnp.mean(q_h * q_h, axis=-1, keepdims=True) + 1e-6) * qs
        k_h = k_h * jax.lax.rsqrt(jnp.mean(k_h * k_h, axis=-1, keepdims=True) + 1e-6) * ks

        # interleaved-pair RoPE (no MXU: lane shift + select)
        q_h = q_h * cq + _rot_half(q_h, even_q) * sq
        k_h = k_h * ck + _rot_half(k_h, even_k) * sk

        # scores for this key tile (contraction over D, f32 accumulation)
        s = jax.lax.dot_general(q_h.astype(cdt), k_h.astype(cdt),
                                (((1,), (1,)), ((), ())),
                                preferred_element_type=jnp.float32)   # (tq, tk)

        # online softmax update
        m_prev = m_ref[h]                                             # (tq, 1)
        m_new = jnp.maximum(m_prev, jnp.max(s, axis=-1, keepdims=True))
        alpha = jnp.exp(m_prev - m_new)
        p = jnp.exp(s - m_new)
        l_ref[h] = alpha * l_ref[h] + jnp.sum(p, axis=-1, keepdims=True)
        pv = jnp.dot(p.astype(cdt), v_h, preferred_element_type=jnp.float32)  # (tq, D)
        acc_ref[:, lo:hi] = alpha * acc_ref[:, lo:hi] + pv
        m_ref[h] = m_new

    @pl.when(ki == pl.num_programs(2) - 1)
    def _finalize():
        for h in range(H):
            lo, hi = h * D, (h + 1) * D
            acc_ref[:, lo:hi] = acc_ref[:, lo:hi] * pl.reciprocal(l_ref[h])
        o_ref[0] = acc_ref[...].astype(o_ref.dtype)   # single lane-dense store


def attention_pallas(qkv3, q_scale, k_scale, cos, sin, num_heads,
                     *, tq_target=256, tk_target=128):
    _, B, L, dim = qkv3.shape
    H = num_heads
    D = dim // H
    tq = _pick_tile(L, tq_target, 8)
    tk = _pick_tile(L, tk_target, 8)
    grid = (B, L // tq, L // tk)
    # Note: for very large f32 tiles, raise pltpu.CompilerParams(vmem_limit_bytes=...)
    # per-chip (64 MiB ceiling on v7x); defaults are ample at these tile targets.
    return pl.pallas_call(
        _attn_kernel,
        out_shape=jax.ShapeDtypeStruct((B, L, dim), qkv3.dtype),
        grid=grid,
        in_specs=[
            pl.BlockSpec((1, D), lambda b, qi, ki: (0, 0)),        # q_scale (x 1/sqrt(D))
            pl.BlockSpec((1, D), lambda b, qi, ki: (0, 0)),        # k_scale
            pl.BlockSpec((tq, D), lambda b, qi, ki: (qi, 0)),      # cos @ q rows
            pl.BlockSpec((tq, D), lambda b, qi, ki: (qi, 0)),      # sin @ q rows
            pl.BlockSpec((tk, D), lambda b, qi, ki: (ki, 0)),      # cos @ k rows
            pl.BlockSpec((tk, D), lambda b, qi, ki: (ki, 0)),      # sin @ k rows
            pl.BlockSpec((1, 1, tq, dim), lambda b, qi, ki: (0, b, qi, 0)),  # q rows
            pl.BlockSpec((1, 1, tk, dim), lambda b, qi, ki: (1, b, ki, 0)),  # k rows
            pl.BlockSpec((1, 1, tk, dim), lambda b, qi, ki: (2, b, ki, 0)),  # v rows
        ],
        out_specs=pl.BlockSpec((1, tq, dim), lambda b, qi, ki: (b, qi, 0)),
        scratch_shapes=[
            pltpu.VMEM((H, tq, 1), jnp.float32),   # running max, per head
            pltpu.VMEM((H, tq, 1), jnp.float32),   # running denom, per head
            pltpu.VMEM((tq, dim), jnp.float32),    # output accumulator (lane-dense)
        ],
        compiler_params=pltpu.CompilerParams(
            dimension_semantics=("parallel", "parallel", "arbitrary")),
    )(q_scale, k_scale, cos, sin, cos, sin, qkv3, qkv3, qkv3)


# ----------------------------------------------------------------------------
# Full SelfAttention forward (wrapper does only layout/param prep, no compute).
# ----------------------------------------------------------------------------
def self_attention_forward(x, cos, sin, params, num_heads):
    B, L, dim = x.shape
    H = num_heads
    D = dim // H
    assert dim % H == 0 and D % 2 == 0
    M = B * L

    # One-time parameter prep (pure layout; in a real model this is done at load time):
    # nn.Linear stores weight (out, in) -> arrange qkv weight as (3, in, out_per_slot).
    w3 = jnp.transpose(params["w_qkv"].reshape(3, dim, dim), (0, 2, 1))
    wp = params["w_proj"].T
    # Fold the attention 1/sqrt(D) score scale into the (linear) q path.
    q_scale = (params["q_scale"] * (D ** -0.5)).reshape(1, D).astype(jnp.float32)
    k_scale = params["k_scale"].reshape(1, D).astype(jnp.float32)

    # qkv projection, written directly in (3, B, L, dim) layout (free reshape).
    qkv3 = qkv_linear(x.reshape(M, dim), w3).reshape(3, B, L, dim)

    # Fused QKNorm + RoPE + flash attention, output directly in (B, L, dim).
    o = attention_pallas(qkv3, q_scale, k_scale, cos, sin, H)

    # Output projection.
    out = linear_bias(o.reshape(M, dim), wp, params["b_proj"])
    return out.reshape(B, L, dim)


# ----------------------------------------------------------------------------
# Pure-JAX reference (for correctness check)
# ----------------------------------------------------------------------------
def reference_forward(x, cos, sin, params, num_heads):
    B, L, dim = x.shape
    H = num_heads
    D = dim // H

    qkv = jnp.einsum("bld,ed->ble", x, params["w_qkv"],
                     precision=jax.lax.Precision.HIGHEST)
    qkv = qkv.reshape(B, L, 3, H, D)
    qkv = jnp.transpose(qkv, (2, 0, 3, 1, 4))
    q, k, v = qkv[0], qkv[1], qkv[2]

    def rmsnorm(t, scale):
        rrms = jax.lax.rsqrt(jnp.mean(t * t, axis=-1, keepdims=True) + 1e-6)
        return t * rrms * scale

    q = rmsnorm(q, params["q_scale"])
    k = rmsnorm(k, params["k_scale"])

    def rot_half(t):
        t0 = t[..., 0::2]
        t1 = t[..., 1::2]
        return jnp.stack((-t1, t0), axis=-1).reshape(t.shape)

    q = q * cos + rot_half(q) * sin
    k = k * cos + rot_half(k) * sin

    s = jnp.einsum("bhqd,bhkd->bhqk", q, k,
                   precision=jax.lax.Precision.HIGHEST) / math.sqrt(D)
    p = jax.nn.softmax(s, axis=-1)
    o = jnp.einsum("bhqk,bhkd->bhqd", p, v,
                   precision=jax.lax.Precision.HIGHEST)
    o = jnp.transpose(o, (0, 2, 1, 3)).reshape(B, L, dim)
    return jnp.einsum("bld,ed->ble", o, params["w_proj"],
                      precision=jax.lax.Precision.HIGHEST) + params["b_proj"]


# ----------------------------------------------------------------------------
def _run_case(seed, B, L, dim, num_heads, atol, rtol):
    D = dim // num_heads
    key = jax.random.PRNGKey(seed)
    k1, k2, k3, k4, k5, k6 = jax.random.split(key, 6)

    params = {
        "w_qkv": jax.random.normal(k1, (3 * dim, dim), jnp.float32) / math.sqrt(dim),
        "w_proj": jax.random.normal(k2, (dim, dim), jnp.float32) / math.sqrt(dim),
        "b_proj": 0.01 * jax.random.normal(k3, (dim,), jnp.float32),
        "q_scale": 1.0 + 0.05 * jax.random.normal(k4, (D,), jnp.float32),
        "k_scale": 1.0 + 0.05 * jax.random.normal(k5, (D,), jnp.float32),
    }
    x = jax.random.normal(k6, (B, L, dim), jnp.float32)

    # Rotary cos/sin, values repeated per interleaved pair: shape (L, D)
    pos = jnp.arange(L, dtype=jnp.float32)
    inv_freq = 1.0 / (10000.0 ** (jnp.arange(0, D, 2, dtype=jnp.float32) / D))
    angles = pos[:, None] * inv_freq[None, :]
    cos = jnp.repeat(jnp.cos(angles), 2, axis=-1)
    sin = jnp.repeat(jnp.sin(angles), 2, axis=-1)

    out = self_attention_forward(x, cos, sin, params, num_heads)
    out = jax.block_until_ready(out)

    ref = reference_forward(x, cos, sin, params, num_heads)
    assert out.shape == (B, L, dim)
    err = float(jnp.max(jnp.abs(out - ref)))
    assert jnp.allclose(out, ref, atol=atol, rtol=rtol), (B, L, dim, num_heads, err)


if __name__ == "__main__":
    # Small config (B=2, L=16, dim=64, H=8): full-block path, tiny head dim.
    _run_case(0, B=2, L=16, dim=64, num_heads=8, atol=2e-3, rtol=2e-3)
    # Moderate config (B=1, L=512, dim=1024, H=8, D=128): exercises K-tiled
    # accumulator matmuls, multi-key-tile online softmax and the lane-aligned
    # pltpu.roll RoPE path.
    _run_case(1, B=1, L=512, dim=1024, num_heads=8, atol=1e-2, rtol=1e-2)
    print("KERNEL_OK")
</pallas_src>

<mosaic_0001>
module attributes {stable_mosaic.version = 11 : i64} {
  func.func @_qkv_matmul_kernel(%arg0: i32, %arg1: i32, %arg2: i32, %arg3: i32, %arg4: memref<32x64xf32, #tpu.memory_space<vmem>>, %arg5: memref<1x64x64xf32, #tpu.memory_space<vmem>>, %arg6: memref<1x32x64xf32, #tpu.memory_space<vmem>>, %arg7: memref<32x64xf32, #tpu.memory_space<vmem>>) attributes {dimension_semantics = [#tpu.dimension_semantics<parallel>, #tpu.dimension_semantics<parallel>, #tpu.dimension_semantics<parallel>, #tpu.dimension_semantics<arbitrary>], iteration_bounds = array<i64: 3, 1, 1, 1>, scalar_prefetch = 0 : i64, scratch_operands = 1 : i64, tpu.core_type = #tpu.core_type<tc>, window_params = [{transform_indices = @transform_0, window_bounds = array<i64: 32, 64>}, {transform_indices = @transform_1, window_bounds = array<i64: 1, 64, 64>}, {transform_indices = @transform_2, window_bounds = array<i64: 1, 32, 64>}]} {
    %c0_i32 = arith.constant 0 : i32
    %0 = arith.cmpi eq, %arg3, %c0_i32 : i32
    %1 = arith.extui %0 : i1 to i32
    %c0_i32_0 = arith.constant 0 : i32
    %2 = arith.cmpi ne, %1, %c0_i32_0 : i32
    scf.if %2 {
      %cst_11 = arith.constant 0.000000e+00 : f32
      %13 = vector.broadcast %cst_11 : f32 to vector<32x64xf32>
      %c0_12 = arith.constant 0 : index
      %c0_13 = arith.constant 0 : index
      %14 = vector.load %arg7[%c0_12, %c0_13] : memref<32x64xf32, #tpu.memory_space<vmem>>, vector<32x64xf32>
      tpu.vector_store %arg7[%c0_12, %c0_13], %13 {strides = array<i32>} : memref<32x64xf32, #tpu.memory_space<vmem>>, vector<32x64xf32>,
    } else {
    }
    %c0 = arith.constant 0 : index
    %c0_1 = arith.constant 0 : index
    %3 = vector.load %arg7[%c0, %c0_1] : memref<32x64xf32, #tpu.memory_space<vmem>>, vector<32x64xf32>
    %c0_2 = arith.constant 0 : index
    %c0_3 = arith.constant 0 : index
    %4 = vector.load %arg4[%c0_2, %c0_3] : memref<32x64xf32, #tpu.memory_space<vmem>>, vector<32x64xf32>
    %c0_4 = arith.constant 0 : index
    %c0_5 = arith.constant 0 : index
    %c0_6 = arith.constant 0 : index
    %5 = vector.load %arg5[%c0_4, %c0_5, %c0_6] : memref<1x64x64xf32, #tpu.memory_space<vmem>>, vector<1x64x64xf32>
    %6 = vector.shape_cast %5 : vector<1x64x64xf32> to vector<64x64xf32>
    %cst = arith.constant dense<0.000000e+00> : vector<32x64xf32>
    %7 = tpu.matmul %4, %6, %cst {dimension_numbers = #tpu.dot_dimension_numbers<[1], [0], [0], [1], [0, 0, 1, 1], [], []>} : vector<32x64xf32>, vector<64x64xf32>, vector<32x64xf32> -> vector<32x64xf32>
    %8 = arith.addf %3, %7 : vector<32x64xf32>
    %c0_7 = arith.constant 0 : index
    %c0_8 = arith.constant 0 : index
    %9 = vector.load %arg7[%c0_7, %c0_8] : memref<32x64xf32, #tpu.memory_space<vmem>>, vector<32x64xf32>
    tpu.vector_store %arg7[%c0_7, %c0_8], %8 {strides = array<i32>} : memref<32x64xf32, #tpu.memory_space<vmem>>, vector<32x64xf32>,
    %c0_i32_9 = arith.constant 0 : i32
    %10 = arith.cmpi eq, %arg3, %c0_i32_9 : i32
    %11 = arith.extui %10 : i1 to i32
    %c0_i32_10 = arith.constant 0 : i32
    %12 = arith.cmpi ne, %11, %c0_i32_10 : i32
    scf.if %12 {
      %c0_11 = arith.constant 0 : index
      %c0_12 = arith.constant 0 : index
      %13 = vector.load %arg7[%c0_11, %c0_12] : memref<32x64xf32, #tpu.memory_space<vmem>>, vector<32x64xf32>
      %c0_13 = arith.constant 0 : index
      %c0_14 = arith.constant 0 : index
      %c0_15 = arith.constant 0 : index
      %14 = vector.load %arg6[%c0_13, %c0_14, %c0_15] : memref<1x32x64xf32, #tpu.memory_space<vmem>>, vector<1x32x64xf32>
      %15 = vector.shape_cast %14 : vector<1x32x64xf32> to vector<32x64xf32>
      %16 = vector.shape_cast %13 : vector<32x64xf32> to vector<1x32x64xf32>
      tpu.vector_store %arg6[%c0_13, %c0_14, %c0_15], %16 {strides = array<i32>} : memref<1x32x64xf32, #tpu.memory_space<vmem>>, vector<1x32x64xf32>,
    } else {
    }
    return
  }
  func.func @transform_0(%arg0: i32, %arg1: i32, %arg2: i32, %arg3: i32) -> (i32, i32) {
    %c0_i32 = arith.constant 0 : i32
    return %arg1, %arg3 : i32, i32
  }
  func.func @transform_1(%arg0: i32, %arg1: i32, %arg2: i32, %arg3: i32) -> (i32, i32, i32) {
    %c0_i32 = arith.constant 0 : i32
    return %arg0, %arg3, %arg2 : i32, i32, i32
  }
  func.func @transform_2(%arg0: i32, %arg1: i32, %arg2: i32, %arg3: i32) -> (i32, i32, i32) {
    %c0_i32 = arith.constant 0 : i32
    return %arg0, %arg1, %arg2 : i32, i32, i32
  }
}

</mosaic_0001>

<bundles_post_ra>
// kernel: tpu_custom_call.1
= control target key start
LH: loop header
LB: loop body
LE: loop exit
PB: predicated region body
PF: predicated region fallthrough
CT: control target
= control target key end

     0   :  { %7 = vsyncpa [#allocation4], 0  ;;  %s1066_s0 = inlined_call_operand.hbm [shape: f32[32,64], index: 0, kind: input, shape index: {}]   ;;  %s1067_s1 = inlined_call_operand.hbm [shape: f32[3,64,64], index: 1, kind: input, shape index: {}]   ;;  %s1068_s2 = inlined_call_operand.hbm [shape: f32[3,32,64], index: 2, kind: output, shape index: {}]  }
   0x1   :  { %8 = vsyncpa [#allocation7], 0 }
   0x2   :  { %10 = vsyncpa [#allocation7 + $0x1], 0 }
   0x3   :  { %11 = vsyncpa [#allocation5], 0 }
   0x4   :  { %13 = vsyncpa [#allocation5 + $0x1], 0  ;;  %s826_s9 = smov 0   ;;  %s828_s10 = smov 0  }
   0x5   :  { %s830_s11 = smov 0   ;;  %s832_s12 = smov 0  }
   0x6   :  { %s834_s13 = smov 0   ;;  %s836_s14 = smov 0  }
   0x7 LB: > { %s498_s15 = sadd.s32 4294967295, %s801_s14   ;;  %s499_s16 = sadd.s32 4294967294, %s801_s14   ;;  %s801_s14 = sphi %s836_s14, %s19_s14   ;;  %s797_s13 = sphi %s834_s13, %s1091_s13   ;;  %s793_s12 = sphi %s832_s12, %s1090_s12   ;;  %s789_s11 = sphi %s830_s11, %s1089_s11   ;;  %s785_s10 = sphi %s828_s10, %s1088_s10   ;;  %s781_s9 = sphi %s826_s9, %s1087_s9  }
   0x8   : > { %p97_p0 = scmp.ne.s32.totalorder %s785_s10, %s781_s9  ;;  %p860_p1 = scmp.eq.s32.totalorder %s498_s15, 0 }
   0x9   : > { %p864_p2 = scmp.eq.s32.totalorder %s498_s15, 2  ;;  %p131_p3 = scmp.eq.s32.totalorder %s499_s16, 2 }
   0xa   : > { %s1073_s17 = scalar_select %p860_p1, 1, 0 }
   0xb   : > { %s1074_s18 = scalar_select %p864_p2, 1, 0 }
   0xc   : > { %p870_p4 = por %p860_p1, %p97_p0  ;;  %p500_p5 = scmp.ge.s32.totalorder %s801_s14, 1 }
   0xd   : > { %p875_p6 = por %p131_p3, %p97_p0  ;;  %p138_p7 = scmp.lt.s32.totalorder %s801_s14, 4 }
   0xe   : > { %s1075_s19 = scalar_select %p870_p4, 1, 0 }
   0xf   : > { %s1076_s20 = scalar_select %p875_p6, 1, 0 }
  0x10   : > { %p880_p8 = pnand %p500_p5, %p138_p7  ;;  %s803_s22 = smov [#allocation3]  }
  0x11   : > { %s154_s23 = sshll.u32 %s803_s22, 4  ;;  %s45_s25 = sadd.s32 1, %s797_s13  ;;  %s155_s23 = int_to_ptr.vmem [resolvable:$true] %s154_s23 }
  0x12   : > { %s1077_s21 = scalar_select %p880_p8, 1, 0 }
  0x13   : > { %p587_p9 = pneg %p880_p8  ;;  %s657_s28 = scalar_lea.hbm %s1066_s0, 512 }
  0x14   : > { %p658_p11 = scmp.ne.s32.totalorder %s1066_s0, %s657_s28  ;;  %p664_p3 = scmp.lt.u32.totalorder %s657_s28, %s1066_s0 }
  0x15   : > { %p888_p10 = pnand %p587_p9, %p860_p1 }
  0x17   : > { %p659_p12 = pneg %p888_p10 }
  0x19   : > { %p660_p13 = pnand %p659_p12, %p658_p11 }
  0x1b   : > { %p661_p0 = pneg %p660_p13 }
  0x1d   : > { %p666_p5 = pnand %p664_p3, %p661_p0 }
  0x1f   : > { %669 = shalt.err (!%p666_p5)
}
  0x20   : > { %s670_s5 = scalar_lea.vmem %s155_s23, 512  ;;  %p678_p4 = scmp.lt.s32.totalorder %s155_s23, %s155_s23 }
  0x21   : > { %p671_p7 = scmp.ne.s32.totalorder %s155_s23, %s670_s5  ;;  %p679_p1 = scmp.lt.s32.totalorder %s670_s5, %s670_s5 }
  0x23   : > { %p673_p9 = pnand %p671_p7, %p659_p12  ;;  %p680_p8 = por %p679_p1, %p678_p4 }
  0x25   : > { %p674_p6 = pneg %p673_p9 }
  0x27   : > { %p681_p2 = pnand %p680_p8, %p674_p6 }
  0x29   : > { %684 = shalt.err (!%p681_p2)
}
  0x2a   : > { %s804_s6 = smov 128   ;;  %s805_s7 = smov 8  }
  0x2b   : > { %590 = dma.hbm_to_vmem [thread:$0]  (!%p888_p10), %s1066_s0, 512, %s155_s23, [#allocation4], %s804_s6, %s804_s6, %s805_s7  }
  0x2c   : > { %p47_p1 = scmp.ge.s32.totalorder %s45_s25, 3  ;;  %s84_s16 = sadd.s32 1, %s789_s11 }
  0x2d   : > { %p91_p2 = scmp.ne.s32.totalorder %s789_s11, %s785_s10  ;;  %p92_p4 = scmp.eq.s32.totalorder %s801_s14, 0 }
  0x2e   : > { %s1093_s25 = smov (%p47_p1, %s45_s25), 0  ;;  %p1080_p8 = scmp.ne.s32.totalorder %s1074_s18, 0 }
  0x2f   : > { %p918_p6 = por %p92_p4, %p91_p2  ;;  %s77_s26 = ssub.s32 %s797_s13, %s1093_s25 }
  0x30   : > { %p924_p11 = por %p1080_p8, %p91_p2  ;;  %p600_p12 = scmp.lt.s32.totalorder %s801_s14, 3 }
  0x31   : > { %p82_p10 = scmp.eq.s32.totalorder %s77_s26, 0  ;;  %s168_s23 = sand.u32 1, %s789_s11  }
  0x32   : > { %s503_s27 = sshll.u32 %s168_s23, 6  ;;  %s519_s29 = sshll.u32 %s797_s13, 10 }
  0x33   : > { %s933_s28 = scalar_select %p82_p10, %s789_s11, %s84_s16  }
  0x34   : > { %s939_s4 = scalar_lea.hbm %s1067_s1, %s519_s29  ;;  %s172_s18 = scalar_lea.vmem [#allocation6], %s503_s27 }
  0x35   : > { %s182_s5 = sshll.u32 %s172_s18, 4  ;;  %p945_p13 = pnand %p600_p12, %p918_p6  ;;  %s941_s5 = int_to_ptr.vmem [resolvable:$true] %s182_s5 }
  0x36   : > { %s949_s15 = scalar_lea.sflag [#allocation7], %s168_s23  ;;  %s685_s16 = scalar_lea.hbm %s939_s4, 1024 }
  0x37   : > { %p686_p0 = scmp.ne.s32.totalorder %s939_s4, %s685_s16  ;;  %p687_p3 = pneg %p945_p13 }
  0x38   : > { %s690_s22 = scalar_lea.hbm %s1067_s1, 3072  ;;  %p691_p9 = scmp.lt.u32.totalorder %s939_s4, %s1067_s1 }
  0x39   : > { %p688_p5 = pnand %p687_p3, %p686_p0  ;;  %p692_p1 = scmp.lt.u32.totalorder %s690_s22, %s685_s16 }
  0x3a   : > { %p694_p4 = scmp.lt.u32.totalorder %s685_s16, %s939_s4 }
  0x3b   : > { %p689_p7 = pneg %p688_p5  ;;  %p693_p2 = por %p692_p1, %p691_p9 }
  0x3d   : > { %p695_p6 = por %p694_p4, %p693_p2 }
  0x3f   : > { %p696_p8 = pnand %p695_p6, %p689_p7 }
  0x41   : > { %699 = shalt.err (!%p696_p8)
}
  0x42   : > { %s700_s23 = scalar_lea.vmem %s941_s5, 1024  ;;  %s806_s3 = smov [#allocation6]  }
  0x43   : > { %p701_p12 = scmp.ne.s32.totalorder %s941_s5, %s700_s23  ;;  %s705_s18 = sshll.u32 %s806_s3, 4  ;;  %s706_s18 = int_to_ptr.vmem [resolvable:$false] %s705_s18 }
  0x44   : > { %s707_s26 = scalar_lea.vmem %s706_s18, 2048  ;;  %p708_p5 = scmp.lt.s32.totalorder %s941_s5, %s706_s18 }
  0x45   : > { %p703_p10 = pnand %p701_p12, %p687_p3  ;;  %p709_p9 = scmp.lt.s32.totalorder %s707_s26, %s700_s23 }
  0x47   : > { %p704_p0 = pneg %p703_p10  ;;  %p710_p1 = por %p709_p9, %p708_p5 }
  0x49   : > { %p711_p2 = pnand %p710_p1, %p704_p0 }
  0x4b   : > { %714 = shalt.err (!%p711_p2)
}
  0x4c   : > { %594 = dma.hbm_to_vmem [thread:$0]  (!%p945_p13), %s939_s4, 1024, %s941_s5, %s949_s15, %s804_s6, %s804_s6, %s805_s7  }
  0x4d   : > { %p1083_p3 = scmp.ne.s32.totalorder %s1077_s21, 0 }
  0x4e   : > { %p1084_p7 = scmp.ne.s32.totalorder (!%p1083_p3), %s1073_s17, 0 }
  0x4f   : > { %194 = sbr.rel (%p1083_p3) target bundleno = 348 (0x15c), region = 28 }
  0x56   : > { %768 = dma.done.wait (%p1084_p7), [#allocation4], 512  }
  0x57   : > { %770 = vsyncadd (%p1084_p7), [#allocation4], 4294966784  ;;  %s987_s16 = sand.u32 1, %s785_s10   ;;  %p1085_p4 = scmp.ne.s32.totalorder %s1075_s19, 0 }
  0x58   : > { %s508_s8 = sshll.u32 %s987_s16, 6  ;;  %s201_s27 = scalar_lea.sflag [#allocation7], %s987_s16 }
  0x59   : > { %s204_s22 = scalar_lea.vmem [#allocation6], %s508_s8 }
  0x5a   : > { %772 = dma.done.wait (%p1085_p4), %s201_s27, 1024  }
  0x5b   : > { %774 = vsyncadd (%p1085_p4), %s201_s27, 4294966272  ;;  %vm232_vm0 = vcmask 523264   ;;  %v807_v0 = vmov 0.0   ;;  %v245_v1 = vld [vmem:[%s204_s22] sm:$0xff]  ;;  %v246_v2 = vld [vmem:[%s204_s22 + $0x8] sm:$0xff]  ;;  %s509_s17 = sshll.u32 %s987_s16, 5 }
  0x5c   : > { %234 = vst.msk [vmem:[#allocation2 + $0x8] sm:$0xff] %vm232_vm0, %v807_v0  ;;  %233 = vst.msk [vmem:[#allocation2] sm:$0xff] %vm232_vm0, %v807_v0  ;;  %v247_v3 = vld [vmem:[%s204_s22 + $0x10] sm:$0xff]  ;;  %v555_v4 = vpack.c.bf16 %v246_v2, %v245_v1  ;;  %v248_v5 = vld [vmem:[%s204_s22 + $0x18] sm:$0xff]  ;;  %s520_s19 = sshll.u32 %s793_s12, 9  ;;  %s224_s21 = scalar_lea.vmem [#allocation8], %s509_s17 }
  0x5d   : > { %235 = vst.msk [vmem:[#allocation2 + $0x10] sm:$0xff] %vm232_vm0, %v807_v0  ;;  %236 = vst.msk [vmem:[#allocation2 + $0x18] sm:$0xff] %vm232_vm0, %v807_v0  ;;  %v559_v6 = vpack.c.bf16 %v248_v5, %v247_v3  ;;  %v249_v7 = vld [vmem:[%s204_s22 + $0x20] sm:$0xff]  ;;  %v250_v8 = vld [vmem:[%s204_s22 + $0x28] sm:$0xff]  ;;  %s387_s6 = sshll.u32 %s224_s21, 4  ;;  %s1012_s5 = scalar_lea.hbm %s1068_s2, %s520_s19  ;;  %s1014_s6 = int_to_ptr.vmem [resolvable:$true] %s387_s6 }
  0x5e   : > { %556 = vmatprep.subr.bf16.mxu0 %v555_v4  ;;  %571 = vmatprep.subr.bf16.mxu1 %v555_v4  ;;  %v241_v9 = vld [vmem:[#allocation3] sm:$0xff]  ;;  %v243_v10 = vld [vmem:[#allocation3 + $0x10] sm:$0xff]  ;;  %v563_v11 = vpack.c.bf16 %v250_v8, %v249_v7  ;;  %v252_v13 = vld [vmem:[%s204_s22 + $0x38] sm:$0xff]  ;;  %s371_s12 = scalar_lea.sflag [#allocation5], %s987_s16  ;;  %s715_s15 = scalar_lea.vmem %s1014_s6, 512 }
  0x5f   : > { %558 = vmatpush3.bf16.msra.mxu0 %v555_v4  ;;  %575 = vmatpush3.bf16.msra.mxu1 %v555_v4  ;;  %v251_v12 = vld [vmem:[%s204_s22 + $0x30] sm:$0xff]  ;;  %v242_v15 = vld [vmem:[#allocation3 + $0x8] sm:$0xff]  ;;  %v244_v16 = vld [vmem:[#allocation3 + $0x18] sm:$0xff]  ;;  %p716_p13 = scmp.ne.s32.totalorder %s1014_s6, %s715_s15  ;;  %s808_s29 = smov [#allocation8]  }
  0x60   : > { %560 = vmatprep.subr.bf16.mxu0 %v559_v6  ;;  %572 = vmatprep.subr.bf16.mxu1 %v559_v6  ;;  %v567_v14 = vpack.c.bf16 %v252_v13, %v251_v12  ;;  %s719_s30 = sshll.u32 %s808_s29, 4  ;;  %s720_s30 = int_to_ptr.vmem [resolvable:$false] %s719_s30 }
  0x61   : > { %549 = vmatprep.mubr.msk.f32.mxu0 %vm232_vm0, %v241_v9  ;;  %552 = vmatprep.mubr.msk.f32.mxu1 %vm232_vm0, %v243_v10  ;;  %p717_p6 = pnand %p716_p13, %p924_p11  ;;  %s721_s23 = scalar_lea.vmem %s720_s30, 1024 }
  0x62   : > { %p722_p12 = scmp.lt.s32.totalorder %s1014_s6, %s720_s30  ;;  %p723_p10 = scmp.lt.s32.totalorder %s721_s23, %s715_s15 }
  0x63   : > { %562 = vmatpush3.bf16.msra.mxu0 %v559_v6  ;;  %576 = vmatpush3.bf16.msra.mxu1 %v559_v6  ;;  %v238_v17 = vld [vmem:[#allocation2 + $0x8] sm:$0xff]  ;;  %v237_v19 = vld [vmem:[#allocation2] sm:$0xff]  ;;  %p718_p8 = pneg %p717_p6 }
  0x64   : > { %564 = vmatprep.subr.bf16.mxu0 %v563_v11  ;;  %573 = vmatprep.subr.bf16.mxu1 %v563_v11  ;;  %v240_v18 = vld [vmem:[#allocation2 + $0x18] sm:$0xff]  ;;  %v239_v20 = vld [vmem:[#allocation2 + $0x10] sm:$0xff]  ;;  %p724_p0 = por %p723_p10, %p722_p12 }
  0x66   : > { %p725_p5 = pnand %p724_p0, %p718_p8 }
  0x67   : > { %566 = vmatpush3.bf16.msra.mxu0 %v563_v11  ;;  %577 = vmatpush3.bf16.msra.mxu1 %v563_v11 }
  0x68   : > { %568 = vmatprep.subr.bf16.mxu0 %v567_v14  ;;  %574 = vmatprep.subr.bf16.mxu1 %v567_v14 }
  0x6b   : > { %570 = vmatpush3.bf16.msra.mxu0 %v567_v14  ;;  %578 = vmatpush3.bf16.msra.mxu1 %v567_v14 }
  0x6e   : > { %550 = vmatmul.mubr.msk.f32.vlgmr.msra.gmra.mrb[0].mxu0 %vm232_vm0, %v242_v15  ;;  %553 = vmatmul.mubr.msk.f32.vlgmr.msra.gmra.mrb[0].mxu1 %vm232_vm0, %v244_v16 }
 0x141   : > { %v551_v21 = vpop.f32.mrb[0].mxu0  ;;  %v554_v22 = vpop.f32.mrb[0].mxu1 }
 0x142   : > { %v352_v23 = vadd.f32 %v551_v21, %v238_v17  ;;  %v354_v24 = vadd.f32 %v554_v22, %v240_v18  ;;  %v332_v25 = vpop.f32.mrb[1].mxu0  ;;  %v342_v26 = vpop.f32.mrb[1].mxu1 }
 0x143   : > { %v351_v27 = vadd.f32 %v332_v25, %v237_v19  ;;  %v353_v28 = vadd.f32 %v342_v26, %v239_v20 }
 0x144   : > { %356 = vst.msk [vmem:[#allocation2 + $0x8] sm:$0xff] %vm232_vm0, %v352_v23  ;;  %358 = vst.msk [vmem:[#allocation2 + $0x18] sm:$0xff] %vm232_vm0, %v354_v24 }
 0x145   : > { %355 = vst.msk [vmem:[#allocation2] sm:$0xff] %vm232_vm0, %v351_v27  ;;  %357 = vst.msk [vmem:[#allocation2 + $0x10] sm:$0xff] %vm232_vm0, %v353_v28 }
 0x14b   : > { %v363_v29 = vld [vmem:[#allocation2 + $0x8] sm:$0xff]  ;;  %v365_v30 = vld [vmem:[#allocation2 + $0x18] sm:$0xff] }
 0x14c   : > { %v362_v31 = vld [vmem:[#allocation2] sm:$0xff]  ;;  %v364_v32 = vld [vmem:[#allocation2 + $0x10] sm:$0xff]  ;;  %367 = vst.msk [vmem:[%s224_s21 + $0x8] sm:$0xff] %vm232_vm0, %v363_v29  ;;  %369 = vst.msk [vmem:[%s224_s21 + $0x18] sm:$0xff] %vm232_vm0, %v365_v30 }
 0x14d   : > { %366 = vst.msk [vmem:[%s224_s21] sm:$0xff] %vm232_vm0, %v362_v31  ;;  %368 = vst.msk [vmem:[%s224_s21 + $0x10] sm:$0xff] %vm232_vm0, %v364_v32 }
 0x14e   : > { %728 = shalt.err (!%p725_p5)
}
 0x14f   : > { %s729_s3 = scalar_lea.hbm %s1012_s5, 512  ;;  %s733_s8 = scalar_lea.hbm %s1068_s2, 1536 }
 0x150   : > { %p730_p9 = scmp.ne.s32.totalorder %s1012_s5, %s729_s3  ;;  %p734_p3 = scmp.lt.u32.totalorder %s1012_s5, %s1068_s2 }
 0x151   : > { %p735_p7 = scmp.lt.u32.totalorder %s733_s8, %s729_s3  ;;  %p737_p13 = scmp.lt.u32.totalorder %s729_s3, %s1012_s5 }
 0x152   : > { %p731_p1 = pnand %p730_p9, %p924_p11 }
 0x153   : > { %p736_p4 = por %p735_p7, %p734_p3 }
 0x154   : > { %p732_p2 = pneg %p731_p1 }
 0x155   : > { %p738_p6 = por %p737_p13, %p736_p4 }
 0x157   : > { %p739_p8 = pnand %p738_p6, %p732_p2 }
 0x159   : > { %742 = shalt.err (!%p739_p8)
}
 0x15a   : > { %s809_s17 = smov 128   ;;  %s810_s19 = smov 8  }
 0x15b   : > { %585 = dma.vmem_to_hbm [thread:$0]  (%p924_p11), %s1014_s6, 512, %s1012_s5, %s371_s12, %s809_s17, %s809_s17, %s810_s19  }
 0x15c PF: > { %p602_p12 = scmp.ge.s32.totalorder %s801_s14, 2  ;;  %s402_s21 = sand.u32 1, %s781_s9  }
 0x15d   : > { %p1086_p10 = scmp.ne.s32.totalorder %s1076_s20, 0  ;;  %s403_s7 = scalar_lea.sflag [#allocation5], %s402_s21 }
 0x15f   : > { %p596_p0 = pnand %p602_p12, %p1086_p10 }
 0x161   : > { %776 = dma.done.wait (!%p596_p0), %s403_s7, 512  }
 0x162   : > { %778 = vsyncadd (!%p596_p0), %s403_s7, 4294966784  ;;  %s19_s14 = sadd.s32 1, %s801_s14   ;;  %s1087_s9 = smov %s785_s10 }
 0x163   : > { %p16_p5 = scmp.ge.s32.totalorder %s19_s14, 5   ;;  %s1088_s10 = smov %s789_s11 }
 0x164   : > { %s1089_s11 = smov %s933_s28  ;;  %s1090_s12 = smov %s797_s13 }
 0x165   : > { %s1091_s13 = smov %s1093_s25  ;;  %18 = sbr.rel (!%p16_p5) target bundleno = 7 (0x7), region = 87 }
 0x16c   :  { %408 = vsyncpa [#allocation4], 1 }
 0x16d   :  { %410 = vsyncpa [#allocation4 + $0x1], 1 }
 0x16e   :  { %411 = vsyncpa [#allocation7], 1 }
 0x16f   :  { %413 = vsyncpa [#allocation7 + $0x1], 1 }
 0x170   :  { %414 = vsyncpa [#allocation5], 1 }
 0x171   :  { %416 = vsyncpa [#allocation5 + $0x1], 1 }

</bundles_post_ra>
